<compile_context>
chip_gen: v7x
topology: tpu7x:2x2x1
jax: 0.10.0
libtpu: 0.0.40
codegen_flags: <defaults>
</compile_context>

<pallas_src>
import functools

import jax
import jax.numpy as jnp
from jax.experimental import pallas as pl
from jax.experimental.pallas import tpu as pltpu


def block_kernel(x_ref, dww_ref, b1_ref, pwt_ref, b2_ref, edge_ref, out_ref,
                 xp_ref, *, H, W, C_in, C_out):
  """One batch item (stride-1 semantics).

  x_ref   : (1, C_in, H*W)   f32  input image, NCHW flattened (free reshape)
  dww_ref : (9, C_in, 1)     f32  depthwise weights * BN1 scale, tap-major
  b1_ref  : (C_in, 1)        f32  folded BN1 bias
  pwt_ref : (C_out, C_in)    bf16 pointwise weights * BN2 scale
  b2_ref  : (C_out, 1)       f32  folded BN2 bias
  edge_ref: (2, H*W)         f32  row0: left-edge mask, row1: right-edge mask
  out_ref : (1, C_out, H*W)  f32  NCHW-native flattened output
  xp_ref  : (C_in, (H+4)*W)  f32  VMEM scratch: vertically zero-padded image
  """
  P = H * W

  # Build the vertically padded image in VMEM (replaces a wrapper-side
  # jnp.pad, i.e. saves a full HBM read+write pass over the activations).
  # Scratch rows: [guard, top pad, H data rows, bottom pad, guard]
  #   -> data interior starts at flat lane offset 2*W.
  xp_ref[...] = jnp.zeros_like(xp_ref)
  xp_ref[:, 2 * W:2 * W + P] = x_ref[0]

  # Depthwise 3x3, stride 1: each tap is a constant lane-shifted slice of the
  # padded scratch.  Horizontal "same" padding is emulated by masking the
  # kj=0 / kj=2 partial sums on the left / right image borders.
  def tap_sum(kj):
    s = None
    for ki in range(3):
      shift = (ki + 1) * W + kj - 1          # static Python int
      contrib = xp_ref[:, shift:shift + P] * dww_ref[ki * 3 + kj]
      s = contrib if s is None else s + contrib
    return s

  acc = (tap_sum(0) * edge_ref[0:1, :]
         + tap_sum(1)
         + tap_sum(2) * edge_ref[1:2, :])

  # BN1 (scale folded into the weights) + ReLU.
  h1 = jnp.maximum(acc + b1_ref[...], 0.0)           # (C_in, P) f32

  # Pointwise 1x1 conv as one MXU matmul: (C_out, C_in) x (C_in, H*W).
  y = jnp.dot(pwt_ref[...], h1.astype(jnp.bfloat16),
              preferred_element_type=jnp.float32)    # (C_out, P) f32

  # BN2 bias + ReLU; lane-dense NCHW-native store (C_out on sublanes).
  out_ref[0] = jnp.maximum(y + b2_ref[...], 0.0)


def block_forward(x_nchw, dw_w, bn1, pw_w, bn2, *, stride=1, eps=1e-5):
  """Block forward.

  x_nchw: (N, C_in, H, W) float32        (PyTorch NCHW convention)
  dw_w  : (C_in, 1, 3, 3)                depthwise conv weight (torch layout)
  pw_w  : (C_out, C_in, 1, 1)            pointwise conv weight (torch layout)
  bn1/bn2: tuples (gamma, beta, running_mean, running_var)
  returns (N, C_out, H_out, W_out) float32
  """
  N, C_in, H, W = x_nchw.shape
  C_out = pw_w.shape[0]
  P = H * W

  # Fold BN scales into the conv weights; keep only the biases (inference).
  g1, be1, m1, v1 = bn1
  inv1 = g1 / jnp.sqrt(v1 + eps)
  dww = (jnp.transpose(dw_w[:, 0, :, :].reshape(C_in, 9), (1, 0))
         * inv1[None, :]).astype(jnp.float32)[:, :, None]          # (9, C_in, 1)
  b1 = (be1 - m1 * inv1).astype(jnp.float32)[:, None]              # (C_in, 1)

  g2, be2, m2, v2 = bn2
  inv2 = g2 / jnp.sqrt(v2 + eps)
  pwt = (pw_w[:, :, 0, 0] * inv2[:, None]).astype(jnp.bfloat16)    # (C_out, C_in)
  b2 = (be2 - m2 * inv2).astype(jnp.float32)[:, None]              # (C_out, 1)

  # Border masks for the kj=0 / kj=2 depthwise taps (flat spatial layout).
  col = jnp.arange(P, dtype=jnp.int32) % W
  edge = jnp.stack([(col != 0), (col != W - 1)]).astype(jnp.float32)  # (2, P)

  x_flat = x_nchw.reshape(N, C_in, P)            # free: NCHW is row-major

  kernel = functools.partial(block_kernel, H=H, W=W, C_in=C_in, C_out=C_out)
  flops = N * (17 * C_in * P + 2 * C_in * C_out * P)
  bytes_accessed = (4 * N * P * (C_in + C_out)        # activations in/out
                    + 4 * 11 * C_in + 2 * C_in * C_out + 4 * 2 * P)

  out = pl.pallas_call(
      kernel,
      out_shape=jax.ShapeDtypeStruct((N, C_out, P), jnp.float32),
      grid=(N,),
      in_specs=[
          pl.BlockSpec((1, C_in, P), lambda n: (n, 0, 0)),
          pl.BlockSpec((9, C_in, 1), lambda n: (0, 0, 0)),
          pl.BlockSpec((C_in, 1), lambda n: (0, 0)),
          pl.BlockSpec((C_out, C_in), lambda n: (0, 0)),
          pl.BlockSpec((C_out, 1), lambda n: (0, 0)),
          pl.BlockSpec((2, P), lambda n: (0, 0)),
      ],
      out_specs=pl.BlockSpec((1, C_out, P), lambda n: (n, 0, 0)),
      scratch_shapes=[pltpu.VMEM((C_in, (H + 4) * W), jnp.float32)],
      compiler_params=pltpu.CompilerParams(
          dimension_semantics=("parallel",),
          vmem_limit_bytes=48 * 1024 * 1024),
      cost_estimate=pl.CostEstimate(
          flops=flops, transcendentals=0, bytes_accessed=bytes_accessed),
  )(x_flat, dww, b1, pwt, b2, edge)

  out = out.reshape(N, C_out, H, W)              # free: already NCHW-ordered
  if stride > 1:
    # stride-s conv with pad=1 equals the stride-1 result subsampled [::s].
    out = out[:, :, ::stride, ::stride]
  return out


def _reference(x_nchw, dw_w, bn1, pw_w, bn2, *, stride=1, eps=1e-5):
  """Pure-JAX reference (lax conv, f32) for correctness checking."""
  C_in = x_nchw.shape[1]
  h = jax.lax.conv_general_dilated(
      x_nchw, dw_w, window_strides=(stride, stride), padding=((1, 1), (1, 1)),
      feature_group_count=C_in,
      dimension_numbers=("NCHW", "OIHW", "NCHW"))
  g1, be1, m1, v1 = bn1
  h = (h - m1[None, :, None, None]) / jnp.sqrt(v1[None, :, None, None] + eps)
  h = h * g1[None, :, None, None] + be1[None, :, None, None]
  h = jnp.maximum(h, 0.0)
  y = jax.lax.conv_general_dilated(
      h, pw_w, window_strides=(1, 1), padding=((0, 0), (0, 0)),
      dimension_numbers=("NCHW", "OIHW", "NCHW"),
      precision=jax.lax.Precision.HIGHEST)
  g2, be2, m2, v2 = bn2
  y = (y - m2[None, :, None, None]) / jnp.sqrt(v2[None, :, None, None] + eps)
  y = y * g2[None, :, None, None] + be2[None, :, None, None]
  return jnp.maximum(y, 0.0)


if __name__ == "__main__":
  # Small shapes consistent with the module: N=2, ch_in=8, ch_out=16, 16x16.
  N, C_in, C_out, H, W = 2, 8, 16, 16, 16
  stride = 1

  key = jax.random.PRNGKey(0)
  ks = jax.random.split(key, 10)

  x = jax.random.normal(ks[0], (N, C_in, H, W), jnp.float32)

  # conv weights (torch layouts, bias=False)
  dw_w = jax.random.normal(ks[1], (C_in, 1, 3, 3), jnp.float32) * 0.3
  pw_w = jax.random.normal(ks[2], (C_out, C_in, 1, 1), jnp.float32) * 0.3

  # BatchNorm params (deterministic synthetic stats; inference semantics)
  bn1 = (1.0 + 0.1 * jax.random.normal(ks[3], (C_in,), jnp.float32),     # gamma
         0.1 * jax.random.normal(ks[4], (C_in,), jnp.float32),           # beta
         0.1 * jax.random.normal(ks[5], (C_in,), jnp.float32),           # mean
         jnp.abs(jax.random.normal(ks[6], (C_in,), jnp.float32)) + 0.5)  # var
  bn2 = (1.0 + 0.1 * jax.random.normal(ks[7], (C_out,), jnp.float32),
         0.1 * jax.random.normal(ks[8], (C_out,), jnp.float32),
         0.1 * jax.random.normal(ks[9], (C_out,), jnp.float32),
         jnp.abs(jax.random.normal(ks[0], (C_out,), jnp.float32)) + 0.5)

  out = jax.block_until_ready(
      block_forward(x, dw_w, bn1, pw_w, bn2, stride=stride))

  ref = _reference(x, dw_w, bn1, pw_w, bn2, stride=stride)
  assert out.shape == ref.shape, (out.shape, ref.shape)
  # Tolerance covers the bf16-input MXU pointwise matmul (f32 accumulate)
  # vs. the f32 HIGHEST-precision reference; structural bugs give O(1) errors
  # and are still caught.
  max_err = float(jnp.max(jnp.abs(out - ref)))
  assert jnp.allclose(out, ref, rtol=3e-2, atol=3e-2), max_err

  print("KERNEL_OK")
</pallas_src>

<mosaic_0001>
module attributes {stable_mosaic.version = 11 : i64} {
  func.func @block_kernel(%arg0: i32, %arg1: memref<1x8x256xf32, #tpu.memory_space<vmem>>, %arg2: memref<9x8x1xf32, #tpu.memory_space<vmem>>, %arg3: memref<8x1xf32, #tpu.memory_space<vmem>>, %arg4: memref<16x8xbf16, #tpu.memory_space<vmem>>, %arg5: memref<16x1xf32, #tpu.memory_space<vmem>>, %arg6: memref<2x256xf32, #tpu.memory_space<vmem>>, %arg7: memref<1x16x256xf32, #tpu.memory_space<vmem>>, %arg8: memref<8x320xf32, #tpu.memory_space<vmem>>) attributes {dimension_semantics = [#tpu.dimension_semantics<parallel>], iteration_bounds = array<i64: 2>, scalar_prefetch = 0 : i64, scratch_operands = 1 : i64, tpu.core_type = #tpu.core_type<tc>, window_params = [{transform_indices = @transform_0, window_bounds = array<i64: 1, 8, 256>}, {pipeline_mode = #tpu.pipeline_mode<synchronous>, transform_indices = @transform_1, window_bounds = array<i64: 9, 8, 1>}, {pipeline_mode = #tpu.pipeline_mode<synchronous>, transform_indices = @transform_2, window_bounds = array<i64: 8, 1>}, {pipeline_mode = #tpu.pipeline_mode<synchronous>, transform_indices = @transform_3, window_bounds = array<i64: 16, 8>}, {pipeline_mode = #tpu.pipeline_mode<synchronous>, transform_indices = @transform_4, window_bounds = array<i64: 16, 1>}, {pipeline_mode = #tpu.pipeline_mode<synchronous>, transform_indices = @transform_5, window_bounds = array<i64: 2, 256>}, {transform_indices = @transform_6, window_bounds = array<i64: 1, 16, 256>}]} {
    %cst = arith.constant 0.000000e+00 : f32
    %0 = vector.broadcast %cst : f32 to vector<8x320xf32>
    %c0 = arith.constant 0 : index
    %c0_0 = arith.constant 0 : index
    %1 = vector.load %arg8[%c0, %c0_0] : memref<8x320xf32, #tpu.memory_space<vmem>>, vector<8x320xf32>
    tpu.vector_store %arg8[%c0, %c0_0], %0 {strides = array<i32>} : memref<8x320xf32, #tpu.memory_space<vmem>>, vector<8x320xf32>,
    %c0_1 = arith.constant 0 : index
    %c0_2 = arith.constant 0 : index
    %c0_3 = arith.constant 0 : index
    %2 = vector.load %arg1[%c0_1, %c0_2, %c0_3] : memref<1x8x256xf32, #tpu.memory_space<vmem>>, vector<1x8x256xf32>
    %3 = vector.shape_cast %2 : vector<1x8x256xf32> to vector<8x256xf32>
    %c0_4 = arith.constant 0 : index
    %c32 = arith.constant 32 : index
    %4 = vector.load %arg8[%c0_4, %c32] : memref<8x320xf32, #tpu.memory_space<vmem>>, vector<8x256xf32>
    tpu.vector_store %arg8[%c0_4, %c32], %3 {strides = array<i32>} : memref<8x320xf32, #tpu.memory_space<vmem>>, vector<8x256xf32>,
    %c0_5 = arith.constant 0 : index
    %c15 = arith.constant 15 : index
    %5 = vector.load %arg8[%c0_5, %c15] : memref<8x320xf32, #tpu.memory_space<vmem>>, vector<8x256xf32>
    %c0_6 = arith.constant 0 : index
    %c0_7 = arith.constant 0 : index
    %c0_8 = arith.constant 0 : index
    %6 = vector.load %arg2[%c0_6, %c0_7, %c0_8] : memref<9x8x1xf32, #tpu.memory_space<vmem>>, vector<1x8x1xf32>
    %7 = vector.shape_cast %6 : vector<1x8x1xf32> to vector<8x1xf32>
    %8 = vector.broadcast %7 : vector<8x1xf32> to vector<8x256xf32>
    %9 = arith.mulf %5, %8 : vector<8x256xf32>
    %c0_9 = arith.constant 0 : index
    %c31 = arith.constant 31 : index
    %10 = vector.load %arg8[%c0_9, %c31] : memref<8x320xf32, #tpu.memory_space<vmem>>, vector<8x256xf32>
    %c3 = arith.constant 3 : index
    %c0_10 = arith.constant 0 : index
    %c0_11 = arith.constant 0 : index
    %11 = vector.load %arg2[%c3, %c0_10, %c0_11] : memref<9x8x1xf32, #tpu.memory_space<vmem>>, vector<1x8x1xf32>
    %12 = vector.shape_cast %11 : vector<1x8x1xf32> to vector<8x1xf32>
    %13 = vector.broadcast %12 : vector<8x1xf32> to vector<8x256xf32>
    %14 = arith.mulf %10, %13 : vector<8x256xf32>
    %15 = arith.addf %9, %14 : vector<8x256xf32>
    %c0_12 = arith.constant 0 : index
    %c47 = arith.constant 47 : index
    %16 = vector.load %arg8[%c0_12, %c47] : memref<8x320xf32, #tpu.memory_space<vmem>>, vector<8x256xf32>
    %c6 = arith.constant 6 : index
    %c0_13 = arith.constant 0 : index
    %c0_14 = arith.constant 0 : index
    %17 = vector.load %arg2[%c6, %c0_13, %c0_14] : memref<9x8x1xf32, #tpu.memory_space<vmem>>, vector<1x8x1xf32>
    %18 = vector.shape_cast %17 : vector<1x8x1xf32> to vector<8x1xf32>
    %19 = vector.broadcast %18 : vector<8x1xf32> to vector<8x256xf32>
    %20 = arith.mulf %16, %19 : vector<8x256xf32>
    %21 = arith.addf %15, %20 : vector<8x256xf32>
    %c0_15 = arith.constant 0 : index
    %c0_16 = arith.constant 0 : index
    %22 = vector.load %arg6[%c0_15, %c0_16] : memref<2x256xf32, #tpu.memory_space<vmem>>, vector<1x256xf32>
    %23 = vector.broadcast %22 : vector<1x256xf32> to vector<8x256xf32>
    %24 = arith.mulf %21, %23 : vector<8x256xf32>
    %c0_17 = arith.constant 0 : index
    %c16 = arith.constant 16 : index
    %25 = vector.load %arg8[%c0_17, %c16] : memref<8x320xf32, #tpu.memory_space<vmem>>, vector<8x256xf32>
    %c1 = arith.constant 1 : index
    %c0_18 = arith.constant 0 : index
    %c0_19 = arith.constant 0 : index
    %26 = vector.load %arg2[%c1, %c0_18, %c0_19] : memref<9x8x1xf32, #tpu.memory_space<vmem>>, vector<1x8x1xf32>
    %27 = vector.shape_cast %26 : vector<1x8x1xf32> to vector<8x1xf32>
    %28 = vector.broadcast %27 : vector<8x1xf32> to vector<8x256xf32>
    %29 = arith.mulf %25, %28 : vector<8x256xf32>
    %c0_20 = arith.constant 0 : index
    %c32_21 = arith.constant 32 : index
    %30 = vector.load %arg8[%c0_20, %c32_21] : memref<8x320xf32, #tpu.memory_space<vmem>>, vector<8x256xf32>
    %c4 = arith.constant 4 : index
    %c0_22 = arith.constant 0 : index
    %c0_23 = arith.constant 0 : index
    %31 = vector.load %arg2[%c4, %c0_22, %c0_23] : memref<9x8x1xf32, #tpu.memory_space<vmem>>, vector<1x8x1xf32>
    %32 = vector.shape_cast %31 : vector<1x8x1xf32> to vector<8x1xf32>
    %33 = vector.broadcast %32 : vector<8x1xf32> to vector<8x256xf32>
    %34 = arith.mulf %30, %33 : vector<8x256xf32>
    %35 = arith.addf %29, %34 : vector<8x256xf32>
    %c0_24 = arith.constant 0 : index
    %c48 = arith.constant 48 : index
    %36 = vector.load %arg8[%c0_24, %c48] : memref<8x320xf32, #tpu.memory_space<vmem>>, vector<8x256xf32>
    %c7 = arith.constant 7 : index
    %c0_25 = arith.constant 0 : index
    %c0_26 = arith.constant 0 : index
    %37 = vector.load %arg2[%c7, %c0_25, %c0_26] : memref<9x8x1xf32, #tpu.memory_space<vmem>>, vector<1x8x1xf32>
    %38 = vector.shape_cast %37 : vector<1x8x1xf32> to vector<8x1xf32>
    %39 = vector.broadcast %38 : vector<8x1xf32> to vector<8x256xf32>
    %40 = arith.mulf %36, %39 : vector<8x256xf32>
    %41 = arith.addf %35, %40 : vector<8x256xf32>
    %42 = arith.addf %24, %41 : vector<8x256xf32>
    %c0_27 = arith.constant 0 : index
    %c17 = arith.constant 17 : index
    %43 = vector.load %arg8[%c0_27, %c17] : memref<8x320xf32, #tpu.memory_space<vmem>>, vector<8x256xf32>
    %c2 = arith.constant 2 : index
    %c0_28 = arith.constant 0 : index
    %c0_29 = arith.constant 0 : index
    %44 = vector.load %arg2[%c2, %c0_28, %c0_29] : memref<9x8x1xf32, #tpu.memory_space<vmem>>, vector<1x8x1xf32>
    %45 = vector.shape_cast %44 : vector<1x8x1xf32> to vector<8x1xf32>
    %46 = vector.broadcast %45 : vector<8x1xf32> to vector<8x256xf32>
    %47 = arith.mulf %43, %46 : vector<8x256xf32>
    %c0_30 = arith.constant 0 : index
    %c33 = arith.constant 33 : index
    %48 = vector.load %arg8[%c0_30, %c33] : memref<8x320xf32, #tpu.memory_space<vmem>>, vector<8x256xf32>
    %c5 = arith.constant 5 : index
    %c0_31 = arith.constant 0 : index
    %c0_32 = arith.constant 0 : index
    %49 = vector.load %arg2[%c5, %c0_31, %c0_32] : memref<9x8x1xf32, #tpu.memory_space<vmem>>, vector<1x8x1xf32>
    %50 = vector.shape_cast %49 : vector<1x8x1xf32> to vector<8x1xf32>
    %51 = vector.broadcast %50 : vector<8x1xf32> to vector<8x256xf32>
    %52 = arith.mulf %48, %51 : vector<8x256xf32>
    %53 = arith.addf %47, %52 : vector<8x256xf32>
    %c0_33 = arith.constant 0 : index
    %c49 = arith.constant 49 : index
    %54 = vector.load %arg8[%c0_33, %c49] : memref<8x320xf32, #tpu.memory_space<vmem>>, vector<8x256xf32>
    %c8 = arith.constant 8 : index
    %c0_34 = arith.constant 0 : index
    %c0_35 = arith.constant 0 : index
    %55 = vector.load %arg2[%c8, %c0_34, %c0_35] : memref<9x8x1xf32, #tpu.memory_space<vmem>>, vector<1x8x1xf32>
    %56 = vector.shape_cast %55 : vector<1x8x1xf32> to vector<8x1xf32>
    %57 = vector.broadcast %56 : vector<8x1xf32> to vector<8x256xf32>
    %58 = arith.mulf %54, %57 : vector<8x256xf32>
    %59 = arith.addf %53, %58 : vector<8x256xf32>
    %c1_36 = arith.constant 1 : index
    %c0_37 = arith.constant 0 : index
    %60 = vector.load %arg6[%c1_36, %c0_37] : memref<2x256xf32, #tpu.memory_space<vmem>>, vector<1x256xf32>
    %61 = vector.broadcast %60 : vector<1x256xf32> to vector<8x256xf32>
    %62 = arith.mulf %59, %61 : vector<8x256xf32>
    %63 = arith.addf %42, %62 : vector<8x256xf32>
    %c0_38 = arith.constant 0 : index
    %c0_39 = arith.constant 0 : index
    %64 = vector.load %arg3[%c0_38, %c0_39] : memref<8x1xf32, #tpu.memory_space<vmem>>, vector<8x1xf32>
    %65 = vector.broadcast %64 : vector<8x1xf32> to vector<8x256xf32>
    %66 = arith.addf %63, %65 : vector<8x256xf32>
    %cst_40 = arith.constant 0.000000e+00 : f32
    %67 = vector.broadcast %cst_40 : f32 to vector<8x256xf32>
    %68 = arith.maximumf %66, %67 : vector<8x256xf32>
    %c0_41 = arith.constant 0 : index
    %c0_42 = arith.constant 0 : index
    %69 = vector.load %arg4[%c0_41, %c0_42] : memref<16x8xbf16, #tpu.memory_space<vmem>>, vector<16x8xbf16>
    %70 = arith.truncf %68 : vector<8x256xf32> to vector<8x256xbf16>
    %cst_43 = arith.constant dense<0.000000e+00> : vector<16x256xf32>
    %71 = tpu.matmul %69, %70, %cst_43 {dimension_numbers = #tpu.dot_dimension_numbers<[1], [0], [0], [1], [0, 0, 1, 1], [], []>} : vector<16x8xbf16>, vector<8x256xbf16>, vector<16x256xf32> -> vector<16x256xf32>
    %c0_44 = arith.constant 0 : index
    %c0_45 = arith.constant 0 : index
    %72 = vector.load %arg5[%c0_44, %c0_45] : memref<16x1xf32, #tpu.memory_space<vmem>>, vector<16x1xf32>
    %73 = vector.broadcast %72 : vector<16x1xf32> to vector<16x256xf32>
    %74 = arith.addf %71, %73 : vector<16x256xf32>
    %cst_46 = arith.constant 0.000000e+00 : f32
    %75 = vector.broadcast %cst_46 : f32 to vector<16x256xf32>
    %76 = arith.maximumf %74, %75 : vector<16x256xf32>
    %c0_47 = arith.constant 0 : index
    %c0_48 = arith.constant 0 : index
    %c0_49 = arith.constant 0 : index
    %77 = vector.load %arg7[%c0_47, %c0_48, %c0_49] : memref<1x16x256xf32, #tpu.memory_space<vmem>>, vector<1x16x256xf32>
    %78 = vector.shape_cast %77 : vector<1x16x256xf32> to vector<16x256xf32>
    %79 = vector.shape_cast %76 : vector<16x256xf32> to vector<1x16x256xf32>
    tpu.vector_store %arg7[%c0_47, %c0_48, %c0_49], %79 {strides = array<i32>} : memref<1x16x256xf32, #tpu.memory_space<vmem>>, vector<1x16x256xf32>,
    return
  }
  func.func @transform_0(%arg0: i32) -> (i32, i32, i32) {
    %c0_i32 = arith.constant 0 : i32
    %c0_i32_0 = arith.constant 0 : i32
    %c0_i32_1 = arith.constant 0 : i32
    return %arg0, %c0_i32, %c0_i32_0 : i32, i32, i32
  }
  func.func @transform_1(%arg0: i32) -> (i32, i32, i32) {
    %c0_i32 = arith.constant 0 : i32
    %c0_i32_0 = arith.constant 0 : i32
    %c0_i32_1 = arith.constant 0 : i32
    %c0_i32_2 = arith.constant 0 : i32
    return %c0_i32, %c0_i32_0, %c0_i32_1 : i32, i32, i32
  }
  func.func @transform_2(%arg0: i32) -> (i32, i32) {
    %c0_i32 = arith.constant 0 : i32
    %c0_i32_0 = arith.constant 0 : i32
    %c0_i32_1 = arith.constant 0 : i32
    return %c0_i32, %c0_i32_0 : i32, i32
  }
  func.func @transform_3(%arg0: i32) -> (i32, i32) {
    %c0_i32 = arith.constant 0 : i32
    %c0_i32_0 = arith.constant 0 : i32
    %c0_i32_1 = arith.constant 0 : i32
    return %c0_i32, %c0_i32_0 : i32, i32
  }
  func.func @transform_4(%arg0: i32) -> (i32, i32) {
    %c0_i32 = arith.constant 0 : i32
    %c0_i32_0 = arith.constant 0 : i32
    %c0_i32_1 = arith.constant 0 : i32
    return %c0_i32, %c0_i32_0 : i32, i32
  }
  func.func @transform_5(%arg0: i32) -> (i32, i32) {
    %c0_i32 = arith.constant 0 : i32
    %c0_i32_0 = arith.constant 0 : i32
    %c0_i32_1 = arith.constant 0 : i32
    return %c0_i32, %c0_i32_0 : i32, i32
  }
  func.func @transform_6(%arg0: i32) -> (i32, i32, i32) {
    %c0_i32 = arith.constant 0 : i32
    %c0_i32_0 = arith.constant 0 : i32
    %c0_i32_1 = arith.constant 0 : i32
    return %arg0, %c0_i32, %c0_i32_0 : i32, i32, i32
  }
}

</mosaic_0001>

<bundles_post_ra>
// kernel: tpu_custom_call.1
= control target key start
LH: loop header
LB: loop body
LE: loop exit
PB: predicated region body
PF: predicated region fallthrough
CT: control target
= control target key end

     0   :  { %11 = vsyncpa [#allocation4], 0  ;;  %s1136_s0 = inlined_call_operand.vmem [shape: f32[2,8,256], index: 0, kind: input, shape index: {}]   ;;  %s1137_s1 = inlined_call_operand.vmem [shape: f32[9,8,1], index: 1, kind: input, shape index: {}]   ;;  %s1138_s2 = inlined_call_operand.vmem [shape: f32[8,1], index: 2, kind: input, shape index: {}]   ;;  %s1139_s3 = inlined_call_operand.vmem [shape: bf16[16,8], index: 3, kind: input, shape index: {}]   ;;  %s1140_s4 = inlined_call_operand.vmem [shape: f32[16,1], index: 4, kind: input, shape index: {}]   ;;  %s1141_s5 = inlined_call_operand.vmem [shape: f32[2,256], index: 5, kind: input, shape index: {}]   ;;  %s1142_s6 = inlined_call_operand.hbm [shape: f32[2,16,256], index: 6, kind: output, shape index: {}]  }
   0x1   :  { %13 = vsyncpa [#allocation4 + $0x1], 0  ;;  %s925_s21 = smov 0   ;;  %s927_s22 = smov 0  }
   0x2   :  { %s929_s23 = smov 0   ;;  %s931_s24 = smov 0  }
   0x3 LB: > { %s946_s25 = sadd.s32 4294967295, %s875_s24   ;;  %s733_s26 = sadd.s32 4294967294, %s875_s24   ;;  %s875_s24 = sphi %s931_s24, %s1148_s24   ;;  %s871_s23 = sphi %s929_s23, %s1147_s23   ;;  %s867_s22 = sphi %s927_s22, %s1146_s22   ;;  %s863_s21 = sphi %s925_s21, %s1145_s21  }
   0x4   : > { %s950_s27 = sadd.s32 1, %s875_s24   ;;  %s157_s28 = sadd.s32 1, %s871_s23 }
   0x5   : > { %s154_s29 = ssub.s32 %s875_s24, %s950_s27  ;;  %p167_p0 = scmp.ne.s32.totalorder %s871_s23, %s867_s22 }
   0x6   : > { %p155_p1 = scmp.eq.s32.totalorder %s154_s29, 0  ;;  %p168_p2 = scmp.eq.s32.totalorder %s946_s25, 1 }
   0x7   : > { %p173_p3 = scmp.ne.s32.totalorder %s867_s22, %s863_s21  ;;  %p174_p4 = scmp.eq.s32.totalorder %s733_s26, 1 }
   0x8   : > { %s961_s30 = scalar_select %p155_p1, %s871_s23, %s157_s28  }
   0x9   : > { %p963_p5 = por %p168_p2, %p167_p0  ;;  %p967_p6 = por %p174_p4, %p173_p3 }
   0xa   : > { %p736_p7 = scmp.ge.s32.totalorder %s875_s24, 1  ;;  %p215_p8 = scmp.lt.s32.totalorder %s875_s24, 3 }
   0xc   : > { %p216_p9 = pnand %p736_p7, %p215_p8 }
   0xd   : > { %v743_v0 = vld [vmem:[%s1137_s1 + $0x20] sm:$0xff] (!%p216_p9)  ;;  %p245_p10 = scmp.lt.s32.totalorder (!%p216_p9), %s946_s25, 1  ;;  %v877_v1 = vmov (!%p216_p9), 0   ;;  %vm253_vm0 = vcmask (!%p216_p9), 523264   ;;  %v878_v2 = vmov (!%p216_p9), 0.0   ;;  %v746_v3 = vld [vmem:[%s1137_s1 + $0x28] sm:$0xff] (!%p216_p9)  ;;  %v342_v27 = vlaneseq (!%p216_p9) }
   0xe   : > { %219 = sbr.rel (%p216_p9) target bundleno = 780 (0x30c), region = 44  ;;  %810 = vset.pattern.permute.xlu1 (!%p216_p9), %v877_v1  ;;  %811 = vset.pattern.permute.xlu0 (!%p216_p9), %v877_v1  ;;  %251 = vst [vmem:[#allocation2] sm:$0xff] (!%p216_p9), %v878_v2  ;;  %254 = vst.msk [vmem:[#allocation2 + $0x10] sm:$0xff] (!%p216_p9), %vm253_vm0, %v878_v2  ;;  %s879_s18 = smov (!%p216_p9), 32   ;;  %v747_v5 = vld [vmem:[%s1137_s1 + $0x40] sm:$0xff] (!%p216_p9)  ;;  %v740_v7 = vld [vmem:[%s1137_s1 + $0x18] sm:$0xff] (!%p216_p9) }
   0xf   : > { %376 = vperm.xlu1 (!%p216_p9), %810, %v743_v0   ;;  %638 = vmatprep.mubr.bf16.mxu0 (!%p216_p9), %v877_v1  ;;  %v744_v8 = vld [vmem:[%s1137_s1 + $0x38] sm:$0xff] (!%p216_p9)  ;;  %v742_v9 = vld [vmem:[%s1137_s1 + $0x8] sm:$0xff] (!%p216_p9)  ;;  %v741_v10 = vld [vmem:[%s1137_s1 + $0x30] sm:$0xff] (!%p216_p9)  ;;  %vm268_vm1 = vcmask (!%p216_p9), 1047808   ;;  %vm263_vm2 = vcmask (!%p216_p9), 261120   ;;  %s880_s16 = smov (!%p216_p9), 112  }
  0x10   : > { %v745_v11 = vld [vmem:[%s1137_s1 + $0x10] sm:$0xff] (!%p216_p9)  ;;  %v343_v30 = vshrl.u32 (!%p216_p9), %v342_v27, 7  ;;  %v748_v34 = vld [vmem:[%s1141_s5 + $0x1] ss:$2 sm:$0x3] (!%p216_p9)  ;;  %s882_s20 = smov (!%p216_p9), 17  }
  0x11   : > { %v275_v42 = vld [vmem:[%s1137_s1] sm:$0xff] (!%p216_p9)  ;;  %s883_s10 = smov (!%p216_p9), 15   ;;  %vm303_vm3 = vcmask (!%p216_p9), 916480   ;;  %s884_s13 = smov (!%p216_p9), 127   ;;  %vm331_vm4 = vcmask (!%p216_p9), 785408   ;;  %vm523_vm5 = vcmask (!%p216_p9), 138240  }
  0x12   : > { %v348_v33 = vsub.s32 (!%p216_p9), 1, %v343_v30  ;;  %v344_v35 = vsub.s32 (!%p216_p9), 0, %v343_v30  ;;  %v340_v44 = vld [vmem:[%s1141_s5] ss:$2 sm:$0x3] (!%p216_p9)  ;;  %vm435_vm6 = vcmask (!%p216_p9), 1039360  }
  0x13   : > { %458 = vperm.xlu1 (!%p216_p9), %810, %v746_v3   ;;  %v549_v49 = vld [vmem:[%s1138_s2] sm:$0xff] (!%p216_p9)  ;;  %vm354_vm7 = vcmask (!%p216_p9), 121856   ;;  %vm540_vm8 = vcmask (!%p216_p9), 1031168   ;;  %s886_s15 = smov (!%p216_p9), 113   ;;  %vm592_vm9 = vcmask (!%p216_p9), 924672   ;;  %vm599_vm10 = vcmask (!%p216_p9), 1043456  }
  0x14   : > { %v518_v38 = vrot.slane (!%p216_p9), %v748_v34, %v348_v33  ;;  %v514_v39 = vrot.slane (!%p216_p9), %v748_v34, %v344_v35  ;;  %v345_v47 = vrot.slane (!%p216_p9), %v340_v44, %v344_v35  ;;  %v349_v50 = vrot.slane (!%p216_p9), %v340_v44, %v348_v33  ;;  %s242_s28 = sand.u32 (!%p216_p9), 1, %s867_s22  }
  0x15   : > { %s246_s11 = scalar_select %p245_p10, %s946_s25, 1  ;;  %vm595_vm11 = vcmask 64512  }
  0x16   : > { %s737_s29 = sshll.u32 %s242_s28, 5 }
  0x17   : > { %s757_s14 = sshll.u32 %s246_s11, 4  ;;  %485 = vperm.xlu1 %810, %v747_v5   ;;  %s244_s9 = scalar_lea.vmem [#allocation3], %s737_s29 }
  0x18   : > { %s249_s17 = scalar_lea.vmem %s1136_s0, %s757_s14  ;;  %s885_s14 = smov 126  }
  0x19   : > { %v255_v4 = vld [vmem:[%s249_s17] sm:$0xff]  ;;  %v256_v6 = vld [vmem:[%s249_s17 + $0x8] sm:$0xff]  ;;  %s881_s17 = smov 96   ;;  %s758_s11 = sshll.u32 %s946_s25, 9 }
  0x1a   : > { %259 = vrot.lane.b32.xlu0 %v255_v4, %s879_s18  ;;  %s1095_s25 = scalar_lea.sflag [#allocation4], %s242_s28 }
  0x1b   : > { %288 = vperm.xlu1 %810, %v740_v7  }
  0x1e   : > { %261 = vrot.lane.b32.xlu0 %v256_v6, %s879_s18 }
  0x1f   : > { %366 = vperm.xlu1 %810, %v742_v9  }
  0x22   : > { %403 = vperm.xlu0 %811, %v744_v8  }
  0x26   : > { %316 = vperm.xlu0 %811, %v741_v10  }
  0x2a   : > { %448 = vperm.xlu0 %811, %v745_v11  }
  0x8c   : > { %v260_v12 = vpop.permute.xlu0 %259 }
  0x8d   : > { %269 = vst.msk [vmem:[#allocation2] sm:$0xff] %vm268_vm1, %v260_v12 }
  0x8e   : > { %v377_v15 = vpop.permute.xlu1 %376 }
  0x90   : > { %v262_v13 = vpop.permute.xlu0 %261 }
  0x91   : > { %v1002_v14 = vsel %vm263_vm2, %v260_v12, %v262_v13  ;;  %271 = vst.msk [vmem:[#allocation2 + $0x10] sm:$0xff] %vm263_vm2, %v262_v13 }
  0x92   : > { %v459_v19 = vpop.permute.xlu1 %458  ;;  %v380_v31 = vmul.f32 %v377_v15, %v1002_v14 }
  0x93   : > { %v462_v32 = vmul.f32 %v459_v19, %v1002_v14 }
  0x94   : > { %v1004_v16 = vld [vmem:[#allocation2] sm:$0xff] }
  0x95   : > { %v379_v17 = vmul.f32 %v377_v15, %v1004_v16  ;;  %v461_v21 = vmul.f32 %v459_v19, %v1004_v16 }
  0x96   : > { %v486_v23 = vpop.permute.xlu1 %485 }
  0x97   : > { %385 = vrot.lane.b32.xlu1 %v379_v17, %s880_s16  ;;  %467 = vrot.lane.b32.xlu0 %v461_v21, %s880_s16  ;;  %v488_v24 = vmul.f32 %v486_v23, %v1004_v16  ;;  %v489_v37 = vmul.f32 %v486_v23, %v1002_v14 }
  0x98   : > { %v1008_v18 = vld [vmem:[#allocation2 + $0x10] sm:$0xff] }
  0x99   : > { %v381_v20 = vmul.f32 %v377_v15, %v1008_v18  ;;  %v463_v22 = vmul.f32 %v459_v19, %v1008_v18  ;;  %v490_v28 = vmul.f32 %v486_v23, %v1008_v18 }
  0x9a   : > { %v289_v40 = vpop.permute.xlu1 %288 }
  0x9b   : > { %389 = vrot.lane.b32.xlu1 %v381_v20, %s880_s16  ;;  %471 = vrot.lane.b32.xlu0 %v463_v22, %s880_s16  ;;  %v291_v41 = vmul.f32 %v289_v40, %v1004_v16  ;;  %v293_v45 = vmul.f32 %v289_v40, %v1008_v18  ;;  %v292_v52 = vmul.f32 %v289_v40, %v1002_v14 }
  0x9e   : > { %v367_v53 = vpop.permute.xlu1 %366 }
  0x9f   : > { %494 = vrot.lane.b32.xlu0 %v488_v24, %s881_s17  ;;  %v371_v61 = vmul.f32 %v367_v53, %v1008_v18  ;;  %v369_v6 = vmul.f32 %v367_v53, %v1004_v16  ;;  %v370_v7 = vmul.f32 %v367_v53, %v1002_v14 }
  0xa1   : > { %v404_v25 = vpop.permute.xlu0 %403 }
  0xa2   : > { %v406_v26 = vmul.f32 %v404_v25, %v1004_v16  ;;  %v408_v29 = vmul.f32 %v404_v25, %v1008_v18  ;;  %v407_v36 = vmul.f32 %v404_v25, %v1002_v14 }
  0xa3   : > { %498 = vrot.lane.b32.xlu0 %v490_v28, %s881_s17 }
  0xa4   : > { %412 = vrot.lane.b32.xlu1 %v406_v26, %s881_s17 }
  0xa5   : > { %v317_v43 = vpop.permute.xlu0 %316 }
  0xa6   : > { %v319_v46 = vmul.f32 %v317_v43, %v1004_v16  ;;  %v321_v48 = vmul.f32 %v317_v43, %v1008_v18  ;;  %v320_v51 = vmul.f32 %v317_v43, %v1002_v14 }
  0xa7   : > { %387 = vrot.lane.b32.xlu0 %v380_v31, %s880_s16 }
  0xa8   : > { %416 = vrot.lane.b32.xlu1 %v408_v29, %s881_s17 }
  0xa9   : > { %v449_v54 = vpop.permute.xlu0 %448 }
  0xaa   : > { %v451_v9 = vmul.f32 %v449_v54, %v1004_v16  ;;  %v452_v15 = vmul.f32 %v449_v54, %v1002_v14  ;;  %v453_v28 = vmul.f32 %v449_v54, %v1008_v18 }
  0xab   : > { %414 = vrot.lane.b32.xlu0 %v407_v36, %s881_s17 }
  0xac   : > { %469 = vrot.lane.b32.xlu1 %v462_v32, %s880_s16 }
  0xaf   : > { %521 = vrot.lane.b32.xlu0 %v518_v38, %s882_s20 }
  0xb0   : > { %496 = vrot.lane.b32.xlu1 %v489_v37, %s881_s17 }
  0xb3   : > { %297 = vrot.lane.b32.xlu0 %v291_v41, %s880_s16 }
  0xb4   : > { %519 = vrot.lane.b32.xlu1 %v514_v39, %s882_s20 }
  0xb7   : > { %301 = vrot.lane.b32.xlu0 %v293_v45, %s880_s16 }
  0xb8   : > { %278 = vperm.xlu1 %810, %v275_v42  }
  0xbb   : > { %350 = vrot.lane.b32.xlu0 %v345_v47, %s883_s10 }
  0xbc   : > { %325 = vrot.lane.b32.xlu1 %v319_v46, %s881_s17 }
  0xbf   : > { %552 = vperm.xlu0 %811, %v549_v49  }
  0xc0   : > { %329 = vrot.lane.b32.xlu1 %v321_v48, %s881_s17 }
  0xc3   : > { %327 = vrot.lane.b32.xlu0 %v320_v51, %s881_s17 }
  0xc4   : > { %352 = vrot.lane.b32.xlu1 %v349_v50, %s883_s10  ;;  %s671_s10 = sshll.u32 %s244_s9, 4  ;;  %s1088_s10 = int_to_ptr.vmem [resolvable:$true] %s671_s10 }
  0xc8   : > { %299 = vrot.lane.b32.xlu1 %v292_v52, %s880_s16  ;;  %s887_s16 = smov [#allocation3]  }
  0xc9   : > { %s817_s17 = sshll.u32 %s887_s16, 4  ;;  %s818_s17 = int_to_ptr.vmem [resolvable:$false] %s817_s17 }
  0xca   : > { %s819_s18 = scalar_lea.vmem %s818_s17, 1024  ;;  %p820_p0 = scmp.lt.s32.totalorder %s1088_s10, %s818_s17 }
 0x109   : > { %v386_v55 = vpop.permute.xlu1 %385  ;;  %v468_v56 = vpop.permute.xlu0 %467 }
 0x10d   : > { %v472_v57 = vpop.permute.xlu0 %471  ;;  %v390_v58 = vpop.permute.xlu1 %389 }
 0x10e   : > { %v398_v62 = vadd.f32 %v390_v58, %v371_v61  ;;  %v480_v32 = vadd.f32 %v472_v57, %v453_v28 }
 0x111   : > { %v495_v59 = vpop.permute.xlu0 %494 }
 0x115   : > { %v499_v63 = vpop.permute.xlu0 %498 }
 0x116   : > { %v413_v60 = vpop.permute.xlu1 %412  ;;  %v507_v36 = vadd.f32 %v499_v63, %v480_v32 }
 0x119   : > { %v388_v2 = vpop.permute.xlu0 %387 }
 0x11a   : > { %v417_v0 = vpop.permute.xlu1 %416  ;;  %v391_v3 = vsel %vm303_vm3, %v386_v55, %v388_v2  ;;  %v392_v4 = vsel %vm303_vm3, %v388_v2, %v390_v58 }
 0x11b   : > { %v425_v1 = vadd.f32 %v417_v0, %v398_v62  ;;  %v396_v10 = vadd.f32 %v391_v3, %v369_v6  ;;  %v397_v11 = vadd.f32 %v392_v4, %v370_v7 }
 0x11d   : > { %433 = vrot.lane.b32.xlu1 %v425_v1, %s884_s13  ;;  %v415_v13 = vpop.permute.xlu0 %414 }
 0x11e   : > { %v470_v5 = vpop.permute.xlu1 %469  ;;  %v418_v19 = vsel %vm331_vm4, %v413_v60, %v415_v13  ;;  %v419_v20 = vsel %vm331_vm4, %v415_v13, %v417_v0 }
 0x11f   : > { %v473_v8 = vsel %vm303_vm3, %v468_v56, %v470_v5  ;;  %v474_v12 = vsel %vm303_vm3, %v470_v5, %v472_v57  ;;  %v423_v22 = vadd.f32 %v418_v19, %v396_v10  ;;  %v424_v23 = vadd.f32 %v419_v20, %v397_v11 }
 0x120   : > { %v478_v17 = vadd.f32 %v473_v8, %v451_v9  ;;  %v479_v26 = vadd.f32 %v474_v12, %v452_v15 }
 0x121   : > { %431 = vrot.lane.b32.xlu0 %v424_v23, %s884_s13  ;;  %429 = vrot.lane.b32.xlu1 %v423_v22, %s884_s13  ;;  %v522_v29 = vpop.permute.xlu0 %521 }
 0x122   : > { %v497_v21 = vpop.permute.xlu1 %496  ;;  %v530_v37 = vmul.f32 %v522_v29, %v507_v36 }
 0x123   : > { %v500_v24 = vsel %vm331_vm4, %v495_v59, %v497_v21  ;;  %v501_v25 = vsel %vm331_vm4, %v497_v21, %v499_v63 }
 0x124   : > { %v505_v27 = vadd.f32 %v500_v24, %v478_v17  ;;  %v506_v30 = vadd.f32 %v501_v25, %v479_v26  ;;  %v566_v26 = vld [vmem:[%s1140_s4] sm:$0xff] }
 0x125   : > { %v298_v38 = vpop.permute.xlu0 %297 }
 0x126   : > { %v520_v31 = vpop.permute.xlu1 %519 }
 0x127   : > { %v524_v33 = vsel %vm523_vm5, %v520_v31, %v522_v29  ;;  %v528_v34 = vmul.f32 %v520_v31, %v505_v27  ;;  %v567_v27 = vld [vmem:[%s1140_s4 + $0x8] sm:$0xff] }
 0x128   : > { %v529_v35 = vmul.f32 %v524_v33, %v506_v30 }
 0x129   : > { %534 = vrot.lane.b32.xlu0 %v528_v34, %s885_s14  ;;  %v302_v40 = vpop.permute.xlu0 %301  ;;  %v812_v34 = vld [vmem:[%s1139_s3] sm:$0xff]  }
 0x12a   : > { %536 = vrot.lane.b32.xlu1 %v529_v35, %s885_s14 }
 0x12d   : > { %538 = vrot.lane.b32.xlu0 %v530_v37, %s885_s14  ;;  %v351_v42 = vpop.permute.xlu0 %350  ;;  %s1093_s14 = scalar_lea.hbm %s1142_s6, %s758_s11 }
 0x137   : > { %v279_v39 = vpop.permute.xlu1 %278 }
 0x138   : > { %v281_v46 = vmul.f32 %v279_v39, %v1004_v16  ;;  %v282_v47 = vmul.f32 %v279_v39, %v1002_v14  ;;  %v283_v59 = vmul.f32 %v279_v39, %v1008_v18 }
 0x13a   : > { %v311_v60 = vadd.f32 %v302_v40, %v283_v59 }
 0x13b   : > { %v326_v41 = vpop.permute.xlu1 %325 }
 0x13e   : > { %v553_v44 = vpop.permute.xlu0 %552 }
 0x13f   : > { %v330_v43 = vpop.permute.xlu1 %329 }
 0x140   : > { %v339_v62 = vadd.f32 %v330_v43, %v311_v60 }
 0x142   : > { %v328_v48 = vpop.permute.xlu0 %327 }
 0x143   : > { %v353_v45 = vpop.permute.xlu1 %352  ;;  %v332_v54 = vsel %vm331_vm4, %v326_v41, %v328_v48  ;;  %v333_v55 = vsel %vm331_vm4, %v328_v48, %v330_v43 }
 0x144   : > { %v355_v63 = vsel %vm354_vm7, %v351_v42, %v353_v45  ;;  %v361_v2 = vmul.f32 %v353_v45, %v339_v62 }
 0x147   : > { %v300_v49 = vpop.permute.xlu1 %299 }
 0x148   : > { %v304_v50 = vsel %vm303_vm3, %v298_v38, %v300_v49  ;;  %v305_v51 = vsel %vm303_vm3, %v300_v49, %v302_v40 }
 0x149   : > { %v309_v52 = vadd.f32 %v304_v50, %v281_v46  ;;  %v310_v53 = vadd.f32 %v305_v51, %v282_v47 }
 0x14b   : > { %v337_v56 = vadd.f32 %v332_v54, %v309_v52  ;;  %v338_v57 = vadd.f32 %v333_v55, %v310_v53 }
 0x14d   : > { %v359_v0 = vmul.f32 %v351_v42, %v337_v56  ;;  %v360_v6 = vmul.f32 %v355_v63, %v338_v57 }
 0x18f   : > { %v434_v58 = vpop.permute.xlu1 %433 }
 0x190   : > { %v443_v8 = vadd.f32 %v434_v58, %v361_v2 }
 0x193   : > { %v430_v14 = vpop.permute.xlu1 %429  ;;  %v432_v16 = vpop.permute.xlu0 %431 }
 0x194   : > { %v436_v61 = vsel %vm435_vm6, %v430_v14, %v432_v16  ;;  %v437_v3 = vsel %vm435_vm6, %v432_v16, %v434_v58 }
 0x195   : > { %v441_v4 = vadd.f32 %v436_v61, %v359_v0  ;;  %v442_v18 = vadd.f32 %v437_v3, %v360_v6 }
 0x19b   : > { %v535_v1 = vpop.permute.xlu0 %534 }
 0x19c   : > { %v537_v5 = vpop.permute.xlu1 %536 }
 0x19d   : > { %v541_v7 = vsel %vm540_vm8, %v535_v1, %v537_v5 }
 0x19e   : > { %v546_v9 = vadd.f32 %v541_v7, %v441_v4 }
 0x19f   : > { %v539_v10 = vpop.permute.xlu0 %538 }
 0x1a0   : > { %v555_v11 = vadd.f32 %v553_v44, %v546_v9  ;;  %v542_v12 = vsel %vm540_vm8, %v537_v5, %v539_v10  ;;  %v548_v13 = vadd.f32 %v539_v10, %v443_v8 }
 0x1a1   : > { %v547_v15 = vadd.f32 %v542_v12, %v442_v18 }
 0x1a2   : > { %v557_v17 = vadd.f32 %v553_v44, %v548_v13  ;;  %v558_v19 = vmax.f32 %v555_v11, 0.0 }
 0x1a3   : > { %v556_v20 = vadd.f32 %v553_v44, %v547_v15 }
 0x1a4   : > { %v560_v21 = vmax.f32 %v557_v17, 0.0  ;;  %v563_v22 = vpack.c.bf16 %v558_v19, %v558_v19 }
 0x1a5   : > { %v559_v23 = vmax.f32 %v556_v20, 0.0 }
 0x1a6   : > { %586 = vrot.lane.b32.xlu1 %v563_v22, %s886_s15  ;;  %v565_v25 = vpack.c.bf16 %v560_v21, %v560_v21 }
 0x1a7   : > { %v564_v24 = vpack.c.bf16 %v559_v23, %v559_v23 }
 0x1a9   : > { %588 = vrot.lane.b32.xlu0 %v564_v24, %s886_s15 }
 0x1aa   : > { %590 = vrot.lane.b32.xlu1 %v565_v25, %s886_s15  ;;  %s813_s15 = scalar_lea.vmem %s1088_s10, 512 }
 0x1ab   : > { %p814_p11 = scmp.ne.s32.totalorder %s1088_s10, %s813_s15  ;;  %p821_p1 = scmp.lt.s32.totalorder %s819_s18, %s813_s15 }
 0x1ad   : > { %570 = vperm.xlu0 %811, %v566_v26   ;;  %p815_p12 = pnand %p814_p11, %p963_p5  ;;  %p822_p2 = por %p821_p1, %p820_p0 }
 0x1ae   : > { %575 = vperm.xlu1 %810, %v567_v27  }
 0x1af   : > { %p816_p13 = pneg %p815_p12 }
 0x1b1   : > { %p823_p3 = pnand %p822_p2, %p816_p13 }
 0x218   : > { %v587_v28 = vpop.permute.xlu1 %586 }
 0x21b   : > { %v589_v29 = vpop.permute.xlu0 %588 }
 0x21c   : > { %v591_v30 = vpop.permute.xlu1 %590  ;;  %v593_v31 = vsel %vm592_vm9, %v587_v28, %v589_v29 }
 0x21d   : > { %v594_v32 = vsel %vm592_vm9, %v589_v29, %v591_v30  ;;  %v601_v33 = vsel %vm599_vm10, %v593_v31, 0 }
 0x21e   : > { %750 = vmatprep.subr.msk.bf16.mxu0 %vm599_vm10, %v594_v32 }
 0x21f   : > { %607 = vmatpush1.bf16.msra.mxu0 %v601_v33 }
 0x222   : > { %751 = vmatmul.mubr.msk.bf16.vlgmr.msra.gmra.mrb[0].mxu0 %vm595_vm11, %v812_v34 }
 0x22c   : > { %v571_v35 = vpop.permute.xlu0 %570 }
 0x22d   : > { %v576_v39 = vpop.permute.xlu1 %575 }
 0x2f5   : > { %v640_v36 = vpop.f32.mrb[0].mxu0 }
 0x2f6   : > { %v641_v37 = vadd.f32 %v640_v36, %v571_v35  ;;  %v642_v38 = vpop.f32.mrb[1].mxu0 }
 0x2f7   : > { %v643_v40 = vadd.f32 %v642_v38, %v571_v35  ;;  %v644_v41 = vpop.f32.mrb[2].mxu0 }
 0x2f8   : > { %v649_v42 = vmax.f32 %v641_v37, 0.0  ;;  %v645_v43 = vadd.f32 %v644_v41, %v576_v39  ;;  %v646_v44 = vpop.f32.mrb[3].mxu0 }
 0x2f9   : > { %v650_v45 = vmax.f32 %v643_v40, 0.0  ;;  %v647_v46 = vadd.f32 %v646_v44, %v576_v39 }
 0x2fa   : > { %653 = vst [vmem:[%s244_s9] sm:$0xff] %v649_v42  ;;  %v651_v47 = vmax.f32 %v645_v43, 0.0 }
 0x2fb   : > { %654 = vst [vmem:[%s244_s9 + $0x8] sm:$0xff] %v650_v45  ;;  %v652_v48 = vmax.f32 %v647_v46, 0.0 }
 0x2fc   : > { %655 = vst [vmem:[%s244_s9 + $0x10] sm:$0xff] %v651_v47 }
 0x2fd   : > { %656 = vst [vmem:[%s244_s9 + $0x18] sm:$0xff] %v652_v48 }
 0x2fe   : > { %826 = shalt.err (!%p823_p3)
}
 0x2ff   : > { %s827_s19 = scalar_lea.hbm %s1093_s14, 512  ;;  %s831_s28 = scalar_lea.hbm %s1142_s6, 1024 }
 0x300   : > { %p828_p4 = scmp.ne.s32.totalorder %s1093_s14, %s827_s19  ;;  %p832_p9 = scmp.lt.u32.totalorder %s1093_s14, %s1142_s6 }
 0x301   : > { %p833_p10 = scmp.lt.u32.totalorder %s831_s28, %s827_s19  ;;  %p835_p12 = scmp.lt.u32.totalorder %s827_s19, %s1093_s14 }
 0x302   : > { %p829_p7 = pnand %p828_p4, %p963_p5 }
 0x303   : > { %p834_p11 = por %p833_p10, %p832_p9 }
 0x304   : > { %p830_p8 = pneg %p829_p7 }
 0x305   : > { %p836_p13 = por %p835_p12, %p834_p11 }
 0x307   : > { %p837_p0 = pnand %p836_p13, %p830_p8 }
 0x309   : > { %840 = shalt.err (!%p837_p0)
}
 0x30a   : > { %s888_s11 = smov 256   ;;  %s889_s12 = smov 16  }
 0x30b   : > { %759 = dma.vmem_to_hbm [thread:$0]  (%p963_p5), %s1088_s10, 512, %s1093_s14, %s1095_s25, %s888_s11, %s888_s11, %s889_s12  }
 0x30c PF: > { %p765_p1 = scmp.ge.s32.totalorder %s875_s24, 2  ;;  %s686_s13 = sand.u32 1, %s863_s21  }
 0x30d   : > { %s687_s15 = scalar_lea.sflag [#allocation4], %s686_s13 }
 0x30e   : > { %p762_p2 = pnand %p765_p1, %p967_p6 }
 0x310   : > { %858 = dma.done.wait (!%p762_p2), %s687_s15, 512  }
 0x311   : > { %860 = vsyncadd (!%p762_p2), %s687_s15, 4294966784  ;;  %p16_p3 = scmp.ge.s32.totalorder %s950_s27, 4   ;;  %s1145_s21 = smov %s867_s22 }
 0x312   : > { %s1146_s22 = smov %s871_s23  ;;  %s1147_s23 = smov %s961_s30 }
 0x313   : > { %s1148_s24 = smov %s950_s27  ;;  %18 = sbr.rel (!%p16_p3) target bundleno = 3 (0x3), region = 88 }
 0x31a   :  { %692 = vsyncpa [#allocation4], 1 }
 0x31b   :  { %694 = vsyncpa [#allocation4 + $0x1], 1 }

</bundles_post_ra>
